<compile_context>
chip_gen: v6e
topology: v6e:2x2x1
jax: 0.10.0
libtpu: 0.0.40
codegen_flags: <defaults>
</compile_context>

<pallas_src>
import functools

import jax
import jax.numpy as jnp
from jax.experimental import pallas as pl
from jax.experimental.pallas import tpu as pltpu

H = 0.5
EPS = 1e-08


def _round_up(v, m):
    return (v + m - 1) // m * m


def _tsk_kernel(x_ref, m1_ref, m2_ref, b_ref, o_ref, *, n_rules):
    # x_ref:  (TN, D)  x tile (f32 or bf16; cast to f32 below)
    # m1_ref: (D, Rp)  = -w            (f32; padded rule cols are 0)
    # m2_ref: (D, Rp)  = 2*c*w         (f32; padded rule cols are 0)
    # b_ref:  (1, Rp)  = -sum_d c^2 w  (padded rule cols = -1e30 softmax mask)
    # o_ref:  (TN, R)  narrow (un-padded) output block
    xf = x_ref[...].astype(jnp.float32)   # weights & dots stay f32 even for bf16 x
    x2 = xf * xf

    logits = (jnp.dot(x2, m1_ref[...], preferred_element_type=jnp.float32)
              + jnp.dot(xf, m2_ref[...], preferred_element_type=jnp.float32)
              + b_ref[...])               # (TN, Rp), f32

    # row softmax over the rule axis (padded lanes: exp(-1e30 - max) == 0)
    row_max = jnp.max(logits, axis=1, keepdims=True)
    e = jnp.exp(logits - row_max)
    denom = jnp.sum(e, axis=1, keepdims=True)
    # exact divide (HBM-bound kernel => free) keeps rows normalized to f32 precision
    o_ref[...] = (e[:, :n_rules] / denom).astype(o_ref.dtype)


def ante_gaussian_tsk(x, centers, sigmas, *, tile_n=4096, out_dtype=jnp.float32):
    """Pallas TPU implementation of AnteGaussianAndTSK.forward.

    x: (N, D) f32 or bf16; centers/sigmas: (D, R) f32.  Returns (N, R) softmax
    firing strengths in `out_dtype`.

    Fast paths:
      * pass bf16 x to halve the x HBM stream (weights/dots stay f32 in-kernel);
      * pass out_dtype=jnp.bfloat16 to halve the dominant output HBM stream.
    """
    n, d = x.shape
    d2, r = centers.shape
    assert d == d2 and sigmas.shape == (d, r)

    # ---- host-side (XLA) precompute of x-independent constants (all f32) ----
    c32 = centers.astype(jnp.float32)
    s32 = sigmas.astype(jnp.float32)
    w = H / (s32 * s32) + EPS                    # (D, R)
    cw = c32 * w                                 # (D, R)
    const = jnp.sum(c32 * cw, axis=0)            # (R,)  = sum_d c^2 w

    # Pad the rule axis to 128 lanes for the in-VMEM compute only; padded rules
    # are masked out of the softmax via a -1e30 bias and sliced off at the store.
    rp = _round_up(max(r, 1), 128)
    m1 = jnp.zeros((d, rp), jnp.float32).at[:, :r].set(-w)
    m2 = jnp.zeros((d, rp), jnp.float32).at[:, :r].set(2.0 * cw)
    bias = jnp.full((1, rp), -1e30, jnp.float32).at[0, :r].set(-const)

    # ---- batch tiling --------------------------------------------------------
    # bf16 x packs 16 rows per sublane group; f32 packs 8.
    tile_mult = 16 if x.dtype == jnp.bfloat16 else 8
    tile_n = max(tile_mult, _round_up(int(tile_n), tile_mult))
    if n <= tile_n:
        if n >= 4096:
            # batch is big enough that an extra grid step is noise: force >=2
            # "parallel" steps so v7x megacore can use both TensorCores.
            tile_n = _round_up(pl.cdiv(n, 2), tile_mult)
        else:
            # single block covering the whole batch (block dim == full array dim,
            # so any n is a legal block shape); no forced split on small batches.
            tile_n = n
    grid = (pl.cdiv(n, tile_n),)   # ragged last block handled by Pallas (no x pad)

    kernel = functools.partial(_tsk_kernel, n_rules=r)

    return pl.pallas_call(
        kernel,
        out_shape=jax.ShapeDtypeStruct((n, r), out_dtype),   # narrow output, no slice
        grid_spec=pltpu.PrefetchScalarGridSpec(
            num_scalar_prefetch=0,
            grid=grid,
            in_specs=[
                pl.BlockSpec((tile_n, d), lambda i: (i, 0)),   # x tile (pipelined)
                pl.BlockSpec((d, rp), lambda i: (0, 0)),        # -w        (const)
                pl.BlockSpec((d, rp), lambda i: (0, 0)),        # 2*c*w     (const)
                pl.BlockSpec((1, rp), lambda i: (0, 0)),        # bias/mask (const)
            ],
            out_specs=pl.BlockSpec((tile_n, r), lambda i: (i, 0)),
        ),
        compiler_params=pltpu.CompilerParams(
            dimension_semantics=("parallel",)),
    )(x, m1, m2, bias)


def _reference(x, centers, sigmas):
    # direct translation of the PyTorch forward (broadcast form, SUM over dim=1)
    xf = x.astype(jnp.float32)
    diff = xf[:, :, None] - centers[None, :, :]                # (N, D, R)
    w = H / (sigmas ** 2) + EPS                                # (D, R)
    logits = jnp.sum(-(diff ** 2) * w[None, :, :], axis=1)     # (N, R)
    return jax.nn.softmax(logits, axis=1)


if __name__ == "__main__":
    key = jax.random.PRNGKey(0)
    k_x, k_c, k_s, k_x2 = jax.random.split(key, 4)

    N, IN_DIM, N_RULES = 8, 16, 8

    x = jax.random.normal(k_x, (N, IN_DIM), dtype=jnp.float32)
    # deterministic "init_model": data-like centers, sigmas ~ Normal(1.0, 0.2)
    centers = jax.random.normal(k_c, (IN_DIM, N_RULES), dtype=jnp.float32)
    sigmas = 1.0 + 0.2 * jax.random.normal(k_s, (IN_DIM, N_RULES), dtype=jnp.float32)

    ref = _reference(x, centers, sigmas)

    # f32 path (tight check; exact divide keeps rows normalized)
    frs = jax.block_until_ready(ante_gaussian_tsk(x, centers, sigmas))
    assert frs.shape == (N, N_RULES)
    assert jnp.allclose(frs, ref, rtol=2e-3, atol=2e-3), "f32 mismatch vs reference"
    assert jnp.allclose(jnp.sum(frs, axis=1), 1.0, atol=1e-5), "rows not normalized"

    # bf16-x fast path (halves the x HBM stream; weights/dots stay f32 in-kernel)
    frs_bf = jax.block_until_ready(
        ante_gaussian_tsk(x.astype(jnp.bfloat16), centers, sigmas))
    assert frs_bf.shape == (N, N_RULES)
    assert bool(jnp.all(jnp.isfinite(frs_bf)))
    assert jnp.allclose(frs_bf, ref, rtol=1e-1, atol=1e-1), "bf16-x mismatch vs reference"

    # bf16-output fast path (halves the dominant output HBM stream)
    frs_o16 = jax.block_until_ready(
        ante_gaussian_tsk(x, centers, sigmas, out_dtype=jnp.bfloat16))
    assert frs_o16.dtype == jnp.bfloat16
    assert jnp.allclose(frs_o16.astype(jnp.float32), ref, rtol=3e-2, atol=3e-2), \
        "bf16-out mismatch vs reference"

    # uneven batch, multi-tile grid, ragged last block (no x pad / no output slice)
    N2 = 200
    x_big = jax.random.normal(k_x2, (N2, IN_DIM), dtype=jnp.float32)
    ref2 = _reference(x_big, centers, sigmas)
    frs2 = jax.block_until_ready(
        ante_gaussian_tsk(x_big, centers, sigmas, tile_n=64))
    assert frs2.shape == (N2, N_RULES)
    assert jnp.allclose(frs2, ref2, rtol=2e-3, atol=2e-3), "tiled mismatch vs reference"

    print("KERNEL_OK")
</pallas_src>

<mosaic_0001>
module attributes {stable_mosaic.version = 11 : i64} {
  func.func @_tsk_kernel(%arg0: i32, %arg1: memref<8x16xf32, #tpu.memory_space<vmem>>, %arg2: memref<16x128xf32, #tpu.memory_space<vmem>>, %arg3: memref<16x128xf32, #tpu.memory_space<vmem>>, %arg4: memref<1x128xf32, #tpu.memory_space<vmem>>, %arg5: memref<8x8xf32, #tpu.memory_space<vmem>>) attributes {dimension_semantics = [#tpu.dimension_semantics<parallel>], iteration_bounds = array<i64: 1>, scalar_prefetch = 0 : i64, scratch_operands = 0 : i64, tpu.core_type = #tpu.core_type<tc>, window_params = [{transform_indices = @transform_0, window_bounds = array<i64: 8, 16>}, {pipeline_mode = #tpu.pipeline_mode<synchronous>, transform_indices = @transform_1, window_bounds = array<i64: 16, 128>}, {pipeline_mode = #tpu.pipeline_mode<synchronous>, transform_indices = @transform_2, window_bounds = array<i64: 16, 128>}, {pipeline_mode = #tpu.pipeline_mode<synchronous>, transform_indices = @transform_3, window_bounds = array<i64: 1, 128>}, {transform_indices = @transform_4, window_bounds = array<i64: 8, 8>}]} {
    %c0 = arith.constant 0 : index
    %c0_0 = arith.constant 0 : index
    %0 = vector.load %arg1[%c0, %c0_0] : memref<8x16xf32, #tpu.memory_space<vmem>>, vector<8x16xf32>
    %1 = arith.mulf %0, %0 : vector<8x16xf32>
    %c0_1 = arith.constant 0 : index
    %c0_2 = arith.constant 0 : index
    %2 = vector.load %arg2[%c0_1, %c0_2] : memref<16x128xf32, #tpu.memory_space<vmem>>, vector<16x128xf32>
    %cst = arith.constant dense<0.000000e+00> : vector<8x128xf32>
    %3 = tpu.matmul %1, %2, %cst {dimension_numbers = #tpu.dot_dimension_numbers<[1], [0], [0], [1], [0, 0, 1, 1], [], []>} : vector<8x16xf32>, vector<16x128xf32>, vector<8x128xf32> -> vector<8x128xf32>
    %c0_3 = arith.constant 0 : index
    %c0_4 = arith.constant 0 : index
    %4 = vector.load %arg3[%c0_3, %c0_4] : memref<16x128xf32, #tpu.memory_space<vmem>>, vector<16x128xf32>
    %cst_5 = arith.constant dense<0.000000e+00> : vector<8x128xf32>
    %5 = tpu.matmul %0, %4, %cst_5 {dimension_numbers = #tpu.dot_dimension_numbers<[1], [0], [0], [1], [0, 0, 1, 1], [], []>} : vector<8x16xf32>, vector<16x128xf32>, vector<8x128xf32> -> vector<8x128xf32>
    %6 = arith.addf %3, %5 : vector<8x128xf32>
    %c0_6 = arith.constant 0 : index
    %c0_7 = arith.constant 0 : index
    %7 = vector.load %arg4[%c0_6, %c0_7] : memref<1x128xf32, #tpu.memory_space<vmem>>, vector<1x128xf32>
    %8 = vector.broadcast %7 : vector<1x128xf32> to vector<8x128xf32>
    %9 = arith.addf %6, %8 : vector<8x128xf32>
    %cst_8 = arith.constant dense<0xFF800000> : vector<8xf32>
    %10 = vector.multi_reduction <maximumf>, %9, %cst_8 [1] : vector<8x128xf32> to vector<8xf32>
    %11 = vector.shape_cast %10 : vector<8xf32> to vector<8x1xf32>
    %12 = vector.broadcast %11 : vector<8x1xf32> to vector<8x128xf32>
    %13 = arith.subf %9, %12 : vector<8x128xf32>
    %14 = math.exp %13 : vector<8x128xf32>
    %cst_9 = arith.constant dense<0.000000e+00> : vector<8xf32>
    %15 = vector.multi_reduction <add>, %14, %cst_9 [1] : vector<8x128xf32> to vector<8xf32>
    %16 = vector.shape_cast %15 : vector<8xf32> to vector<8x1xf32>
    %17 = vector.extract_strided_slice %14 {offsets = [0, 0], sizes = [8, 8], strides = [1, 1]} : vector<8x128xf32> to vector<8x8xf32>
    %18 = vector.broadcast %16 : vector<8x1xf32> to vector<8x8xf32>
    %19 = arith.divf %17, %18 : vector<8x8xf32>
    %c0_10 = arith.constant 0 : index
    %c0_11 = arith.constant 0 : index
    %20 = vector.load %arg5[%c0_10, %c0_11] : memref<8x8xf32, #tpu.memory_space<vmem>>, vector<8x8xf32>
    tpu.vector_store %arg5[%c0_10, %c0_11], %19 {strides = array<i32>} : memref<8x8xf32, #tpu.memory_space<vmem>>, vector<8x8xf32>,
    return
  }
  func.func @transform_0(%arg0: i32) -> (i32, i32) {
    %c0_i32 = arith.constant 0 : i32
    %c0_i32_0 = arith.constant 0 : i32
    return %arg0, %c0_i32 : i32, i32
  }
  func.func @transform_1(%arg0: i32) -> (i32, i32) {
    %c0_i32 = arith.constant 0 : i32
    %c0_i32_0 = arith.constant 0 : i32
    %c0_i32_1 = arith.constant 0 : i32
    return %c0_i32, %c0_i32_0 : i32, i32
  }
  func.func @transform_2(%arg0: i32) -> (i32, i32) {
    %c0_i32 = arith.constant 0 : i32
    %c0_i32_0 = arith.constant 0 : i32
    %c0_i32_1 = arith.constant 0 : i32
    return %c0_i32, %c0_i32_0 : i32, i32
  }
  func.func @transform_3(%arg0: i32) -> (i32, i32) {
    %c0_i32 = arith.constant 0 : i32
    %c0_i32_0 = arith.constant 0 : i32
    %c0_i32_1 = arith.constant 0 : i32
    return %c0_i32, %c0_i32_0 : i32, i32
  }
  func.func @transform_4(%arg0: i32) -> (i32, i32) {
    %c0_i32 = arith.constant 0 : i32
    %c0_i32_0 = arith.constant 0 : i32
    return %arg0, %c0_i32 : i32, i32
  }
}

</mosaic_0001>

<bundles_post_ra>
// kernel: tpu_custom_call.1
= control target key start
LH: loop header
LB: loop body
LE: loop exit
PB: predicated region body
PF: predicated region fallthrough
CT: control target
= control target key end

     0   :  { %9 = vsyncpa [#allocation3], 0  ;;  %s414_s0 = inlined_call_operand.hbm [shape: f32[8,16], index: 0, kind: input, shape index: {}]   ;;  %s415_s1 = inlined_call_operand.hbm [shape: f32[16,128], index: 1, kind: input, shape index: {}]   ;;  %s416_s2 = inlined_call_operand.hbm [shape: f32[16,128], index: 2, kind: input, shape index: {}]   ;;  %s417_s3 = inlined_call_operand.vmem [shape: f32[1,128], index: 3, kind: input, shape index: {}]   ;;  %s418_s4 = inlined_call_operand.hbm [shape: f32[8,8], index: 4, kind: output, shape index: {}]  }
   0x1   :  { %10 = vsyncpa [#allocation6], 0 }
   0x2   :  { %11 = vsyncpa [#allocation4], 0  ;;  %s366_s15 = smov [#allocation5]  }
   0x3   :  { %s27_s16 = sshll.u32 %s366_s15, 4  ;;  %s28_s16 = int_to_ptr.vmem [resolvable:$true] %s27_s16 }
   0x4   :  { %s288_s17 = scalar_lea.vmem %s28_s16, 256  ;;  %p293_p1 = scmp.lt.s32.totalorder %s28_s16, %s28_s16 }
   0x5   :  { %p289_p0 = scmp.ne.s32.totalorder %s28_s16, %s288_s17  ;;  %p294_p2 = scmp.lt.s32.totalorder %s288_s17, %s288_s17 }
   0x7   :  { %p295_p3 = por %p294_p2, %p293_p1 }
   0x9   :  { %p296_p4 = pnand %p295_p3, %p289_p0 }
   0xb   :  { %299 = shalt.err (!%p296_p4)
}
   0xc   :  { %s367_s18 = smov 128   ;;  %s368_s19 = smov 8  }
   0xd   :  { %33 = dma.hbm_to_vmem [thread:$0]  %s415_s1, 256, %s28_s16, [#allocation6], %s367_s18, %s367_s18, %s368_s19  }
   0xe   :  { %s369_s22 = smov [#allocation2]   ;;  %s370_s24 = smov [#allocation7]  }
   0xf   :  { %s18_s23 = sshll.u32 %s369_s22, 4  ;;  %s39_s25 = sshll.u32 %s370_s24, 4  ;;  %s19_s23 = int_to_ptr.vmem [resolvable:$true] %s18_s23  ;;  %s40_s25 = int_to_ptr.vmem [resolvable:$true] %s39_s25 }
  0x10   :  { %s308_s26 = scalar_lea.vmem %s19_s23, 128  ;;  %p313_p6 = scmp.lt.s32.totalorder %s19_s23, %s19_s23 }
  0x11   :  { %p309_p5 = scmp.ne.s32.totalorder %s19_s23, %s308_s26  ;;  %p314_p7 = scmp.lt.s32.totalorder %s308_s26, %s308_s26 }
  0x13   :  { %p315_p8 = por %p314_p7, %p313_p6 }
  0x15   :  { %p316_p9 = pnand %p315_p8, %p309_p5 }
  0x17   :  { %319 = shalt.err (!%p316_p9)
}
  0x18   :  { %21 = dma.hbm_to_vmem [thread:$0]  %s414_s0, 128, %s19_s23, [#allocation3]  }
  0x19   :  { %s328_s29 = scalar_lea.vmem %s40_s25, 256  ;;  %p333_p11 = scmp.lt.s32.totalorder %s40_s25, %s40_s25 }
  0x1a   :  { %p329_p10 = scmp.ne.s32.totalorder %s40_s25, %s328_s29  ;;  %p334_p12 = scmp.lt.s32.totalorder %s328_s29, %s328_s29 }
  0x1c   :  { %p335_p13 = por %p334_p12, %p333_p11 }
  0x1e   :  { %p336_p0 = pnand %p335_p13, %p329_p10 }
  0x20   :  { %339 = shalt.err (!%p336_p0)
}
  0x21   :  { %45 = dma.hbm_to_vmem [thread:$0]  %s416_s2, 256, %s40_s25, [#allocation6], %s367_s18, %s367_s18, %s368_s19  }
  0x22   :  { %360 = dma.done.wait [#allocation3], 128  }
  0x23   :  { %361 = vsyncadd [#allocation3], 4294967168 }
  0x24   :  { %362 = dma.done.wait [#allocation6], 512  }
  0x25   :  { %363 = vsyncadd [#allocation6], 4294966784  ;;  %v371_v0 = vmov 0.0   ;;  %vm372_vm0 = vmmov 0   ;;  %v62_v1 = vld [vmem:[#allocation7 + $0x8] sm:$0xff]  ;;  %v60_v2 = vld [vmem:[#allocation5 + $0x8] sm:$0xff] }
  0x26   :  { %254 = vmatprep.subr.mxu0 %v371_v0  ;;  %261 = vmatprep.subr.mxu1 %v371_v0  ;;  %v61_v3 = vld [vmem:[#allocation7] sm:$0xff]  ;;  %v59_v4 = vld [vmem:[#allocation5] sm:$0xff]  ;;  %v57_v5 = vld [vmem:[#allocation2] sm:$0xff]  ;;  %vm63_vm1 = vcmask 130048   ;;  %s373_s5 = smov [#allocation8]   ;;  %vm227_vm2 = vcmask 64512  }
  0x27   :  { %258 = vmatprep.mubr.msk.f32.mxu0 %vm372_vm0, %v371_v0  ;;  %265 = vmatprep.mubr.msk.f32.mxu1 %vm372_vm0, %v371_v0  ;;  %v58_v6 = vmul.f32 %v57_v5, %v57_v5  ;;  %v247_v9 = vld [vmem:[%s417_s3] ss:$0 sm:$0xff]  ;;  %s235_s6 = sshll.u32 %s373_s5, 4  ;;  %s236_s6 = int_to_ptr.vmem [resolvable:$true] %s235_s6 }
  0x28   :  { %255 = vmatpush3.msra.mxu0 %v62_v1  ;;  %262 = vmatpush3.msra.mxu1 %v60_v2  ;;  %s340_s3 = scalar_lea.vmem %s236_s6, 128  ;;  %p345_p2 = scmp.lt.s32.totalorder %s236_s6, %s236_s6 }
  0x29   :  { %256 = vmatprep.subr.mxu0 %v371_v0  ;;  %263 = vmatprep.subr.mxu1 %v371_v0  ;;  %p341_p1 = scmp.ne.s32.totalorder %s236_s6, %s340_s3  ;;  %p346_p3 = scmp.lt.s32.totalorder %s340_s3, %s340_s3 }
  0x2a   :  { %257 = vmatpush3.msra.mxu0 %v61_v3  ;;  %264 = vmatpush3.msra.mxu1 %v59_v4 }
  0x2b   :  { %259 = vmatmul.mubr.msk.f32.vlgmr.msra.gmra.mxu0 %vm63_vm1, %v57_v5  ;;  %266 = vmatmul.mubr.msk.f32.vlgmr.msra.gmra.mxu1 %vm63_vm1, %v58_v6  ;;  %p347_p4 = por %p346_p3, %p345_p2 }
  0x2d   :  { %p348_p5 = pnand %p347_p4, %p341_p1 }
  0xeb   :  { %v133_v7 = vpop.f32.mrf.mxu0  ;;  %v206_v8 = vpop.f32.mrf.mxu1 }
  0xec   :  { %v207_v10 = vadd.f32 %v206_v8, %v133_v7 }
  0xed   :  { %v260_v11 = vpop.f32.mrf.mxu0  ;;  %v267_v12 = vpop.f32.mrf.mxu1 }
  0xee   :  { %v217_v13 = vadd.f32 %v247_v9, %v207_v10 }
  0xf0   :  { %218 = vmax.xlane.f32.xlu0 %v217_v13 }
 0x179   :  { %v219_v14 = vpop.xlane.xlu0 %218 }
 0x17a   :  { %v220_v15 = vsub.f32 %v217_v13, %v219_v14 }
 0x17c   :  { %v221_v16 = vmul.f32 1.442695, %v220_v15 }
 0x17e   :  { %276 = vpow2.f32 %v221_v16 }
 0x18b   :  { %v277_v17 = vpop.eup %276 }
 0x18c   :  { %223 = vadd.xlane.f32.xlu0 %v277_v17 }
 0x215   :  { %v224_v18 = vpop.xlane.xlu0 %223 }
 0x216   :  { %278 = vrcp.f32 %v224_v18 }
 0x223   :  { %v279_v19 = vpop.eup %278 }
 0x224   :  { %v226_v20 = vmul.f32 %v279_v19, %v277_v17 }
 0x226   :  { %228 = vst.msk [vmem:[#allocation8] sm:$0xff] %vm227_vm2, %v226_v20 }
 0x227   :  { %351 = shalt.err (!%p348_p5)
}
 0x228   :  { %238 = dma.vmem_to_hbm [thread:$0]  %s236_s6, 128, %s418_s4, [#allocation4]  }
 0x229   :  { %364 = dma.done.wait [#allocation4], 128  }
 0x22a   :  { %365 = vsyncadd [#allocation4], 4294967168 }
 0x22b   :  { %242 = vsyncpa [#allocation3], 1 }
 0x22c   :  { %243 = vsyncpa [#allocation6], 1 }
 0x22d   :  { %244 = vsyncpa [#allocation4], 1 }

</bundles_post_ra>
